<compile_context>
chip_gen: v7x
topology: tpu7x:2x2x1
jax: 0.10.0
libtpu: 0.0.40
codegen_flags: <defaults>
</compile_context>

<pallas_src>
import math

import numpy as np
import jax
import jax.numpy as jnp
from jax import lax
from jax.experimental import pallas as pl
from jax.experimental.pallas import tpu as pltpu


def _round_up(x: int, m: int) -> int:
    return ((x + m - 1) // m) * m


def _sublane_multiple(dtype) -> int:
    # (8, 128) vreg tiling; sub-32-bit dtypes pack along sublanes.
    itemsize = jnp.dtype(dtype).itemsize
    return 8 * max(1, 4 // itemsize)


# -----------------------------------------------------------------------------
# Fast path: table resident in VMEM, gather = in-VMEM dynamic row reads.
# -----------------------------------------------------------------------------
def _make_vmem_gather_kernel(tb: int, num_fields: int, embed_dim: int):
    F, D = num_fields, embed_dim

    def kernel(idx_ref, offs_ref, table_ref, out_ref):
        # idx_ref  : SMEM (B_pad*F,) int32  raw per-field indices (flattened)
        # offs_ref : SMEM (F,)       int32  cumulative field offsets
        # table_ref: VMEM (V, D)            whole table, resident across grid
        # out_ref  : VMEM (tb, F*D)         one sample per (lane-dense) row
        base = pl.program_id(0) * tb

        def body(t, carry):
            flat = (base + t) * F
            # Offset add fused in-kernel; per-field rows gathered with dynamic
            # VMEM reads and concatenated along lanes -> one full-lane-extent
            # store per sample (no scratch, no partial-lane stores).
            parts = [
                table_ref[pl.ds(idx_ref[flat + f] + offs_ref[f], 1), :]
                for f in range(F)
            ]
            out_ref[pl.ds(t, 1), :] = jnp.concatenate(parts, axis=-1)
            return carry

        lax.fori_loop(0, tb, body, 0, unroll=8)

    return kernel


def _forward_vmem_table(idx_flat, offs, table, B, F, D, TB, num_blocks):
    V = table.shape[0]
    kernel = _make_vmem_gather_kernel(TB, F, D)
    out = pl.pallas_call(
        kernel,
        out_shape=jax.ShapeDtypeStruct((TB * num_blocks, F * D), table.dtype),
        grid_spec=pltpu.PrefetchScalarGridSpec(
            num_scalar_prefetch=2,                      # idx_flat, offs -> SMEM
            grid=(num_blocks,),
            # Constant index_map: the table is DMA'd into VMEM once and kept
            # resident for every grid step (copy elided when block unchanged).
            in_specs=[pl.BlockSpec((V, D), lambda i, *_: (0, 0))],
            out_specs=pl.BlockSpec((TB, F * D), lambda i, *_: (i, 0)),
        ),
        compiler_params=pltpu.CompilerParams(
            dimension_semantics=("parallel",),          # megacore on v7x
            vmem_limit_bytes=32 * 1024 * 1024),
    )(idx_flat, offs, table)
    return out[:B].reshape(B, F, D)


# -----------------------------------------------------------------------------
# Fallback path: table stays in HBM, per-row gather DMAs land directly in the
# output block, one shared DMA semaphore per step.
# -----------------------------------------------------------------------------
def _make_hbm_gather_kernel(tb: int, num_fields: int, embed_dim: int):
    F, D = num_fields, embed_dim

    def kernel(idx_ref, offs_ref, table_hbm, out_ref, sem):
        # table_hbm: HBM (V, D)     -- never copied wholesale into VMEM
        # out_ref  : VMEM (tb*F, D) -- row DMAs land directly here (no scratch)
        # sem      : single shared DMA semaphore for all row gathers of a step
        base = pl.program_id(0) * tb

        def issue(t, carry):
            flat = (base + t) * F
            for f in range(F):                           # static unroll
                row = idx_ref[flat + f] + offs_ref[f]    # offset add in-kernel
                pltpu.make_async_copy(
                    table_hbm.at[pl.ds(row, 1), :],
                    out_ref.at[pl.ds(t * F + f, 1), :],
                    sem.at[0]).start()
            return carry

        def drain(t, carry):
            for f in range(F):
                pltpu.make_async_copy(
                    table_hbm.at[pl.ds(0, 1), :],
                    out_ref.at[pl.ds(t * F + f, 1), :],
                    sem.at[0]).wait()
            return carry

        # Issue all row gathers first (fully overlapped), then drain them all
        # on the shared semaphore before the block writeback is allowed.
        lax.fori_loop(0, tb, issue, 0, unroll=8)
        lax.fori_loop(0, tb, drain, 0, unroll=8)
        # TODO(synk): cross-grid-step gather prefetch (double-buffered landing)
        # and >=512 B coalesced descriptors are not implemented in this
        # descriptor-latency-bound fallback.

    return kernel


def _forward_hbm_table(idx_flat, offs, table, B, F, D, TB, num_blocks):
    kernel = _make_hbm_gather_kernel(TB, F, D)
    out = pl.pallas_call(
        kernel,
        out_shape=jax.ShapeDtypeStruct((TB * num_blocks * F, D), table.dtype),
        grid_spec=pltpu.PrefetchScalarGridSpec(
            num_scalar_prefetch=2,                      # idx_flat, offs -> SMEM
            grid=(num_blocks,),
            in_specs=[pl.BlockSpec(memory_space=pl.ANY)],  # table stays in HBM
            out_specs=pl.BlockSpec((TB * F, D), lambda i, *_: (i, 0)),
            scratch_shapes=[pltpu.SemaphoreType.DMA((1,))],
        ),
        compiler_params=pltpu.CompilerParams(
            dimension_semantics=("parallel",),
            vmem_limit_bytes=32 * 1024 * 1024),
    )(idx_flat, offs, table)
    return out[: B * F].reshape(B, F, D)


# -----------------------------------------------------------------------------
# Public wrapper: matches FeaturesEmbedding.forward semantics.
# -----------------------------------------------------------------------------
def features_embedding_forward(x_idx, table, field_dims,
                               vmem_table_budget_bytes=12 * 1024 * 1024):
    """x_idx: (B, F) int per-field raw indices. table: (sum(field_dims), D).
    Returns (B, F, D) embeddings, matching the PyTorch FeaturesEmbedding."""
    B, F = x_idx.shape
    V, D = table.shape
    field_dims = np.asarray(field_dims)
    offsets = np.concatenate(([0], np.cumsum(field_dims)[:-1])).astype(np.int32)

    itemsize = jnp.dtype(table.dtype).itemsize
    sub = _sublane_multiple(table.dtype)
    table_bytes = V * D * itemsize
    # Budget is conservative: the pipeline may double-buffer the table block,
    # and v7x only has 64 MiB VMEM per TensorCore (32 MiB scoped default).
    use_vmem_table = table_bytes <= vmem_table_budget_bytes

    # Samples per grid step: large enough to amortize the ~0.35 us per-step
    # overhead (~1 MiB of output per step on the fast path), with the output
    # block's sublane dim a multiple of `sub` and minimal batch padding.
    if use_vmem_table:
        row_bytes = F * D * itemsize               # one sample per output row
        tb_target = max(sub, min(2048, (1 << 20) // max(row_bytes, 1)))
        tb_base = sub                              # out block sublane dim = TB
    else:
        tb_target = max(1, 128 // F)               # bound outstanding row DMAs
        tb_base = sub // math.gcd(F, sub)          # TB*F multiple of `sub`
    num_blocks = max(1, math.ceil(B / max(tb_target, 1)))
    TB = _round_up(math.ceil(B / num_blocks), tb_base)
    B_pad = TB * num_blocks

    x_pad = x_idx.astype(jnp.int32)
    if B_pad != B:
        # Padded samples gather index 0 (+ offset), a valid row; sliced off
        # in the wrapper, so results are unaffected.
        x_pad = jnp.concatenate(
            [x_pad, jnp.zeros((B_pad - B, F), jnp.int32)], axis=0)
    idx_flat = x_pad.reshape(-1)                    # (B_pad*F,) int32 -> SMEM
    offs = jnp.asarray(offsets, jnp.int32)          # (F,)       int32 -> SMEM

    if use_vmem_table:
        return _forward_vmem_table(idx_flat, offs, table, B, F, D, TB, num_blocks)
    return _forward_hbm_table(idx_flat, offs, table, B, F, D, TB, num_blocks)


def features_embedding_reference(x_idx, table, field_dims):
    """Pure-JAX reference mirroring the PyTorch forward."""
    field_dims = np.asarray(field_dims)
    offsets = np.concatenate(([0], np.cumsum(field_dims)[:-1])).astype(np.int32)
    shifted = x_idx.astype(jnp.int32) + jnp.asarray(offsets)[None, :]
    B, F = x_idx.shape
    return jnp.take(table, shifted.reshape(-1), axis=0).reshape(B, F, table.shape[1])


if __name__ == "__main__":
    field_dims = [7, 11, 13, 17]          # num_fields = 4, vocab = 48
    embed_dim = 16
    B = 8

    key = jax.random.PRNGKey(0)
    k_tab, k_x = jax.random.split(key)

    V = int(np.sum(field_dims))
    # nn.Embedding weight with xavier_uniform_ init
    bound = float(np.sqrt(6.0 / (V + embed_dim)))
    table = jax.random.uniform(k_tab, (V, embed_dim), jnp.float32, -bound, bound)

    # x: Long tensor (B, num_fields), per-field index in [0, field_dims[f])
    x_cols = [jax.random.randint(jax.random.fold_in(k_x, f), (B,), 0, int(fd))
              for f, fd in enumerate(field_dims)]
    x_idx = jnp.stack(x_cols, axis=1).astype(jnp.int32)

    y = features_embedding_forward(x_idx, table, field_dims)
    y = jax.block_until_ready(y)

    y_ref = features_embedding_reference(x_idx, table, field_dims)
    assert y.shape == (B, len(field_dims), embed_dim)
    np.testing.assert_allclose(np.asarray(y), np.asarray(y_ref), atol=0.0, rtol=0.0)

    print("KERNEL_OK")
</pallas_src>

<mosaic_0001>
module attributes {stable_mosaic.version = 11 : i64} {
  func.func @kernel(%arg0: i32, %arg1: memref<32xi32, #tpu.memory_space<smem>>, %arg2: memref<4xi32, #tpu.memory_space<smem>>, %arg3: memref<48x16xf32, #tpu.memory_space<vmem>>, %arg4: memref<8x64xf32, #tpu.memory_space<vmem>>) attributes {dimension_semantics = [#tpu.dimension_semantics<parallel>], iteration_bounds = array<i64: 1>, scalar_prefetch = 2 : i64, scratch_operands = 0 : i64, tpu.core_type = #tpu.core_type<tc>, window_params = [{pipeline_mode = #tpu.pipeline_mode<synchronous>, transform_indices = @transform_0, window_bounds = array<i64: 48, 16>}, {transform_indices = @transform_1, window_bounds = array<i64: 8, 64>}]} {
    %c8_i32 = arith.constant 8 : i32
    %0 = arith.muli %arg0, %c8_i32 : i32
    %c0_i32 = arith.constant 0 : i32
    %1 = arith.addi %0, %c0_i32 : i32
    %c4_i32 = arith.constant 4 : i32
    %2 = arith.muli %1, %c4_i32 : i32
    %c0_i32_0 = arith.constant 0 : i32
    %3 = arith.addi %2, %c0_i32_0 : i32
    %4 = arith.index_cast %3 : i32 to index
    %5 = memref.load %arg1[%4] : memref<32xi32, #tpu.memory_space<smem>>
    %c0 = arith.constant 0 : index
    %6 = memref.load %arg2[%c0] : memref<4xi32, #tpu.memory_space<smem>>
    %7 = arith.addi %5, %6 : i32
    %8 = arith.index_cast %7 : i32 to index
    %c0_1 = arith.constant 0 : index
    %9 = vector.load %arg3[%8, %c0_1] : memref<48x16xf32, #tpu.memory_space<vmem>>, vector<1x16xf32>
    %c1_i32 = arith.constant 1 : i32
    %10 = arith.addi %2, %c1_i32 : i32
    %11 = arith.index_cast %10 : i32 to index
    %12 = memref.load %arg1[%11] : memref<32xi32, #tpu.memory_space<smem>>
    %c1 = arith.constant 1 : index
    %13 = memref.load %arg2[%c1] : memref<4xi32, #tpu.memory_space<smem>>
    %14 = arith.addi %12, %13 : i32
    %15 = arith.index_cast %14 : i32 to index
    %c0_2 = arith.constant 0 : index
    %16 = vector.load %arg3[%15, %c0_2] : memref<48x16xf32, #tpu.memory_space<vmem>>, vector<1x16xf32>
    %c2_i32 = arith.constant 2 : i32
    %17 = arith.addi %2, %c2_i32 : i32
    %18 = arith.index_cast %17 : i32 to index
    %19 = memref.load %arg1[%18] : memref<32xi32, #tpu.memory_space<smem>>
    %c2 = arith.constant 2 : index
    %20 = memref.load %arg2[%c2] : memref<4xi32, #tpu.memory_space<smem>>
    %21 = arith.addi %19, %20 : i32
    %22 = arith.index_cast %21 : i32 to index
    %c0_3 = arith.constant 0 : index
    %23 = vector.load %arg3[%22, %c0_3] : memref<48x16xf32, #tpu.memory_space<vmem>>, vector<1x16xf32>
    %c3_i32 = arith.constant 3 : i32
    %24 = arith.addi %2, %c3_i32 : i32
    %25 = arith.index_cast %24 : i32 to index
    %26 = memref.load %arg1[%25] : memref<32xi32, #tpu.memory_space<smem>>
    %c3 = arith.constant 3 : index
    %27 = memref.load %arg2[%c3] : memref<4xi32, #tpu.memory_space<smem>>
    %28 = arith.addi %26, %27 : i32
    %29 = arith.index_cast %28 : i32 to index
    %c0_4 = arith.constant 0 : index
    %30 = vector.load %arg3[%29, %c0_4] : memref<48x16xf32, #tpu.memory_space<vmem>>, vector<1x16xf32>
    %31 = tpu.concatenate %9, %16, %23, %30 in 1 : vector<1x16xf32>, vector<1x16xf32>, vector<1x16xf32>, vector<1x16xf32> -> vector<1x64xf32>
    %32 = arith.index_cast %c0_i32 : i32 to index
    %c0_5 = arith.constant 0 : index
    %33 = vector.load %arg4[%32, %c0_5] : memref<8x64xf32, #tpu.memory_space<vmem>>, vector<1x64xf32>
    tpu.vector_store %arg4[%32, %c0_5], %31 {strides = array<i32>} : memref<8x64xf32, #tpu.memory_space<vmem>>, vector<1x64xf32>,
    %c1_i32_6 = arith.constant 1 : i32
    %34 = arith.addi %0, %c1_i32_6 : i32
    %c4_i32_7 = arith.constant 4 : i32
    %35 = arith.muli %34, %c4_i32_7 : i32
    %c0_i32_8 = arith.constant 0 : i32
    %36 = arith.addi %35, %c0_i32_8 : i32
    %37 = arith.index_cast %36 : i32 to index
    %38 = memref.load %arg1[%37] : memref<32xi32, #tpu.memory_space<smem>>
    %c0_9 = arith.constant 0 : index
    %39 = memref.load %arg2[%c0_9] : memref<4xi32, #tpu.memory_space<smem>>
    %40 = arith.addi %38, %39 : i32
    %41 = arith.index_cast %40 : i32 to index
    %c0_10 = arith.constant 0 : index
    %42 = vector.load %arg3[%41, %c0_10] : memref<48x16xf32, #tpu.memory_space<vmem>>, vector<1x16xf32>
    %c1_i32_11 = arith.constant 1 : i32
    %43 = arith.addi %35, %c1_i32_11 : i32
    %44 = arith.index_cast %43 : i32 to index
    %45 = memref.load %arg1[%44] : memref<32xi32, #tpu.memory_space<smem>>
    %c1_12 = arith.constant 1 : index
    %46 = memref.load %arg2[%c1_12] : memref<4xi32, #tpu.memory_space<smem>>
    %47 = arith.addi %45, %46 : i32
    %48 = arith.index_cast %47 : i32 to index
    %c0_13 = arith.constant 0 : index
    %49 = vector.load %arg3[%48, %c0_13] : memref<48x16xf32, #tpu.memory_space<vmem>>, vector<1x16xf32>
    %c2_i32_14 = arith.constant 2 : i32
    %50 = arith.addi %35, %c2_i32_14 : i32
    %51 = arith.index_cast %50 : i32 to index
    %52 = memref.load %arg1[%51] : memref<32xi32, #tpu.memory_space<smem>>
    %c2_15 = arith.constant 2 : index
    %53 = memref.load %arg2[%c2_15] : memref<4xi32, #tpu.memory_space<smem>>
    %54 = arith.addi %52, %53 : i32
    %55 = arith.index_cast %54 : i32 to index
    %c0_16 = arith.constant 0 : index
    %56 = vector.load %arg3[%55, %c0_16] : memref<48x16xf32, #tpu.memory_space<vmem>>, vector<1x16xf32>
    %c3_i32_17 = arith.constant 3 : i32
    %57 = arith.addi %35, %c3_i32_17 : i32
    %58 = arith.index_cast %57 : i32 to index
    %59 = memref.load %arg1[%58] : memref<32xi32, #tpu.memory_space<smem>>
    %c3_18 = arith.constant 3 : index
    %60 = memref.load %arg2[%c3_18] : memref<4xi32, #tpu.memory_space<smem>>
    %61 = arith.addi %59, %60 : i32
    %62 = arith.index_cast %61 : i32 to index
    %c0_19 = arith.constant 0 : index
    %63 = vector.load %arg3[%62, %c0_19] : memref<48x16xf32, #tpu.memory_space<vmem>>, vector<1x16xf32>
    %64 = tpu.concatenate %42, %49, %56, %63 in 1 : vector<1x16xf32>, vector<1x16xf32>, vector<1x16xf32>, vector<1x16xf32> -> vector<1x64xf32>
    %65 = arith.index_cast %c1_i32_6 : i32 to index
    %c0_20 = arith.constant 0 : index
    %66 = vector.load %arg4[%65, %c0_20] : memref<8x64xf32, #tpu.memory_space<vmem>>, vector<1x64xf32>
    tpu.vector_store %arg4[%65, %c0_20], %64 {strides = array<i32>} : memref<8x64xf32, #tpu.memory_space<vmem>>, vector<1x64xf32>,
    %c2_i32_21 = arith.constant 2 : i32
    %67 = arith.addi %0, %c2_i32_21 : i32
    %c4_i32_22 = arith.constant 4 : i32
    %68 = arith.muli %67, %c4_i32_22 : i32
    %c0_i32_23 = arith.constant 0 : i32
    %69 = arith.addi %68, %c0_i32_23 : i32
    %70 = arith.index_cast %69 : i32 to index
    %71 = memref.load %arg1[%70] : memref<32xi32, #tpu.memory_space<smem>>
    %c0_24 = arith.constant 0 : index
    %72 = memref.load %arg2[%c0_24] : memref<4xi32, #tpu.memory_space<smem>>
    %73 = arith.addi %71, %72 : i32
    %74 = arith.index_cast %73 : i32 to index
    %c0_25 = arith.constant 0 : index
    %75 = vector.load %arg3[%74, %c0_25] : memref<48x16xf32, #tpu.memory_space<vmem>>, vector<1x16xf32>
    %c1_i32_26 = arith.constant 1 : i32
    %76 = arith.addi %68, %c1_i32_26 : i32
    %77 = arith.index_cast %76 : i32 to index
    %78 = memref.load %arg1[%77] : memref<32xi32, #tpu.memory_space<smem>>
    %c1_27 = arith.constant 1 : index
    %79 = memref.load %arg2[%c1_27] : memref<4xi32, #tpu.memory_space<smem>>
    %80 = arith.addi %78, %79 : i32
    %81 = arith.index_cast %80 : i32 to index
    %c0_28 = arith.constant 0 : index
    %82 = vector.load %arg3[%81, %c0_28] : memref<48x16xf32, #tpu.memory_space<vmem>>, vector<1x16xf32>
    %c2_i32_29 = arith.constant 2 : i32
    %83 = arith.addi %68, %c2_i32_29 : i32
    %84 = arith.index_cast %83 : i32 to index
    %85 = memref.load %arg1[%84] : memref<32xi32, #tpu.memory_space<smem>>
    %c2_30 = arith.constant 2 : index
    %86 = memref.load %arg2[%c2_30] : memref<4xi32, #tpu.memory_space<smem>>
    %87 = arith.addi %85, %86 : i32
    %88 = arith.index_cast %87 : i32 to index
    %c0_31 = arith.constant 0 : index
    %89 = vector.load %arg3[%88, %c0_31] : memref<48x16xf32, #tpu.memory_space<vmem>>, vector<1x16xf32>
    %c3_i32_32 = arith.constant 3 : i32
    %90 = arith.addi %68, %c3_i32_32 : i32
    %91 = arith.index_cast %90 : i32 to index
    %92 = memref.load %arg1[%91] : memref<32xi32, #tpu.memory_space<smem>>
    %c3_33 = arith.constant 3 : index
    %93 = memref.load %arg2[%c3_33] : memref<4xi32, #tpu.memory_space<smem>>
    %94 = arith.addi %92, %93 : i32
    %95 = arith.index_cast %94 : i32 to index
    %c0_34 = arith.constant 0 : index
    %96 = vector.load %arg3[%95, %c0_34] : memref<48x16xf32, #tpu.memory_space<vmem>>, vector<1x16xf32>
    %97 = tpu.concatenate %75, %82, %89, %96 in 1 : vector<1x16xf32>, vector<1x16xf32>, vector<1x16xf32>, vector<1x16xf32> -> vector<1x64xf32>
    %98 = arith.index_cast %c2_i32_21 : i32 to index
    %c0_35 = arith.constant 0 : index
    %99 = vector.load %arg4[%98, %c0_35] : memref<8x64xf32, #tpu.memory_space<vmem>>, vector<1x64xf32>
    tpu.vector_store %arg4[%98, %c0_35], %97 {strides = array<i32>} : memref<8x64xf32, #tpu.memory_space<vmem>>, vector<1x64xf32>,
    %c3_i32_36 = arith.constant 3 : i32
    %100 = arith.addi %0, %c3_i32_36 : i32
    %c4_i32_37 = arith.constant 4 : i32
    %101 = arith.muli %100, %c4_i32_37 : i32
    %c0_i32_38 = arith.constant 0 : i32
    %102 = arith.addi %101, %c0_i32_38 : i32
    %103 = arith.index_cast %102 : i32 to index
    %104 = memref.load %arg1[%103] : memref<32xi32, #tpu.memory_space<smem>>
    %c0_39 = arith.constant 0 : index
    %105 = memref.load %arg2[%c0_39] : memref<4xi32, #tpu.memory_space<smem>>
    %106 = arith.addi %104, %105 : i32
    %107 = arith.index_cast %106 : i32 to index
    %c0_40 = arith.constant 0 : index
    %108 = vector.load %arg3[%107, %c0_40] : memref<48x16xf32, #tpu.memory_space<vmem>>, vector<1x16xf32>
    %c1_i32_41 = arith.constant 1 : i32
    %109 = arith.addi %101, %c1_i32_41 : i32
    %110 = arith.index_cast %109 : i32 to index
    %111 = memref.load %arg1[%110] : memref<32xi32, #tpu.memory_space<smem>>
    %c1_42 = arith.constant 1 : index
    %112 = memref.load %arg2[%c1_42] : memref<4xi32, #tpu.memory_space<smem>>
    %113 = arith.addi %111, %112 : i32
    %114 = arith.index_cast %113 : i32 to index
    %c0_43 = arith.constant 0 : index
    %115 = vector.load %arg3[%114, %c0_43] : memref<48x16xf32, #tpu.memory_space<vmem>>, vector<1x16xf32>
    %c2_i32_44 = arith.constant 2 : i32
    %116 = arith.addi %101, %c2_i32_44 : i32
    %117 = arith.index_cast %116 : i32 to index
    %118 = memref.load %arg1[%117] : memref<32xi32, #tpu.memory_space<smem>>
    %c2_45 = arith.constant 2 : index
    %119 = memref.load %arg2[%c2_45] : memref<4xi32, #tpu.memory_space<smem>>
    %120 = arith.addi %118, %119 : i32
    %121 = arith.index_cast %120 : i32 to index
    %c0_46 = arith.constant 0 : index
    %122 = vector.load %arg3[%121, %c0_46] : memref<48x16xf32, #tpu.memory_space<vmem>>, vector<1x16xf32>
    %c3_i32_47 = arith.constant 3 : i32
    %123 = arith.addi %101, %c3_i32_47 : i32
    %124 = arith.index_cast %123 : i32 to index
    %125 = memref.load %arg1[%124] : memref<32xi32, #tpu.memory_space<smem>>
    %c3_48 = arith.constant 3 : index
    %126 = memref.load %arg2[%c3_48] : memref<4xi32, #tpu.memory_space<smem>>
    %127 = arith.addi %125, %126 : i32
    %128 = arith.index_cast %127 : i32 to index
    %c0_49 = arith.constant 0 : index
    %129 = vector.load %arg3[%128, %c0_49] : memref<48x16xf32, #tpu.memory_space<vmem>>, vector<1x16xf32>
    %130 = tpu.concatenate %108, %115, %122, %129 in 1 : vector<1x16xf32>, vector<1x16xf32>, vector<1x16xf32>, vector<1x16xf32> -> vector<1x64xf32>
    %131 = arith.index_cast %c3_i32_36 : i32 to index
    %c0_50 = arith.constant 0 : index
    %132 = vector.load %arg4[%131, %c0_50] : memref<8x64xf32, #tpu.memory_space<vmem>>, vector<1x64xf32>
    tpu.vector_store %arg4[%131, %c0_50], %130 {strides = array<i32>} : memref<8x64xf32, #tpu.memory_space<vmem>>, vector<1x64xf32>,
    %c4_i32_51 = arith.constant 4 : i32
    %133 = arith.addi %0, %c4_i32_51 : i32
    %c4_i32_52 = arith.constant 4 : i32
    %134 = arith.muli %133, %c4_i32_52 : i32
    %c0_i32_53 = arith.constant 0 : i32
    %135 = arith.addi %134, %c0_i32_53 : i32
    %136 = arith.index_cast %135 : i32 to index
    %137 = memref.load %arg1[%136] : memref<32xi32, #tpu.memory_space<smem>>
    %c0_54 = arith.constant 0 : index
    %138 = memref.load %arg2[%c0_54] : memref<4xi32, #tpu.memory_space<smem>>
    %139 = arith.addi %137, %138 : i32
    %140 = arith.index_cast %139 : i32 to index
    %c0_55 = arith.constant 0 : index
    %141 = vector.load %arg3[%140, %c0_55] : memref<48x16xf32, #tpu.memory_space<vmem>>, vector<1x16xf32>
    %c1_i32_56 = arith.constant 1 : i32
    %142 = arith.addi %134, %c1_i32_56 : i32
    %143 = arith.index_cast %142 : i32 to index
    %144 = memref.load %arg1[%143] : memref<32xi32, #tpu.memory_space<smem>>
    %c1_57 = arith.constant 1 : index
    %145 = memref.load %arg2[%c1_57] : memref<4xi32, #tpu.memory_space<smem>>
    %146 = arith.addi %144, %145 : i32
    %147 = arith.index_cast %146 : i32 to index
    %c0_58 = arith.constant 0 : index
    %148 = vector.load %arg3[%147, %c0_58] : memref<48x16xf32, #tpu.memory_space<vmem>>, vector<1x16xf32>
    %c2_i32_59 = arith.constant 2 : i32
    %149 = arith.addi %134, %c2_i32_59 : i32
    %150 = arith.index_cast %149 : i32 to index
    %151 = memref.load %arg1[%150] : memref<32xi32, #tpu.memory_space<smem>>
    %c2_60 = arith.constant 2 : index
    %152 = memref.load %arg2[%c2_60] : memref<4xi32, #tpu.memory_space<smem>>
    %153 = arith.addi %151, %152 : i32
    %154 = arith.index_cast %153 : i32 to index
    %c0_61 = arith.constant 0 : index
    %155 = vector.load %arg3[%154, %c0_61] : memref<48x16xf32, #tpu.memory_space<vmem>>, vector<1x16xf32>
    %c3_i32_62 = arith.constant 3 : i32
    %156 = arith.addi %134, %c3_i32_62 : i32
    %157 = arith.index_cast %156 : i32 to index
    %158 = memref.load %arg1[%157] : memref<32xi32, #tpu.memory_space<smem>>
    %c3_63 = arith.constant 3 : index
    %159 = memref.load %arg2[%c3_63] : memref<4xi32, #tpu.memory_space<smem>>
    %160 = arith.addi %158, %159 : i32
    %161 = arith.index_cast %160 : i32 to index
    %c0_64 = arith.constant 0 : index
    %162 = vector.load %arg3[%161, %c0_64] : memref<48x16xf32, #tpu.memory_space<vmem>>, vector<1x16xf32>
    %163 = tpu.concatenate %141, %148, %155, %162 in 1 : vector<1x16xf32>, vector<1x16xf32>, vector<1x16xf32>, vector<1x16xf32> -> vector<1x64xf32>
    %164 = arith.index_cast %c4_i32_51 : i32 to index
    %c0_65 = arith.constant 0 : index
    %165 = vector.load %arg4[%164, %c0_65] : memref<8x64xf32, #tpu.memory_space<vmem>>, vector<1x64xf32>
    tpu.vector_store %arg4[%164, %c0_65], %163 {strides = array<i32>} : memref<8x64xf32, #tpu.memory_space<vmem>>, vector<1x64xf32>,
    %c5_i32 = arith.constant 5 : i32
    %166 = arith.addi %0, %c5_i32 : i32
    %c4_i32_66 = arith.constant 4 : i32
    %167 = arith.muli %166, %c4_i32_66 : i32
    %c0_i32_67 = arith.constant 0 : i32
    %168 = arith.addi %167, %c0_i32_67 : i32
    %169 = arith.index_cast %168 : i32 to index
    %170 = memref.load %arg1[%169] : memref<32xi32, #tpu.memory_space<smem>>
    %c0_68 = arith.constant 0 : index
    %171 = memref.load %arg2[%c0_68] : memref<4xi32, #tpu.memory_space<smem>>
    %172 = arith.addi %170, %171 : i32
    %173 = arith.index_cast %172 : i32 to index
    %c0_69 = arith.constant 0 : index
    %174 = vector.load %arg3[%173, %c0_69] : memref<48x16xf32, #tpu.memory_space<vmem>>, vector<1x16xf32>
    %c1_i32_70 = arith.constant 1 : i32
    %175 = arith.addi %167, %c1_i32_70 : i32
    %176 = arith.index_cast %175 : i32 to index
    %177 = memref.load %arg1[%176] : memref<32xi32, #tpu.memory_space<smem>>
    %c1_71 = arith.constant 1 : index
    %178 = memref.load %arg2[%c1_71] : memref<4xi32, #tpu.memory_space<smem>>
    %179 = arith.addi %177, %178 : i32
    %180 = arith.index_cast %179 : i32 to index
    %c0_72 = arith.constant 0 : index
    %181 = vector.load %arg3[%180, %c0_72] : memref<48x16xf32, #tpu.memory_space<vmem>>, vector<1x16xf32>
    %c2_i32_73 = arith.constant 2 : i32
    %182 = arith.addi %167, %c2_i32_73 : i32
    %183 = arith.index_cast %182 : i32 to index
    %184 = memref.load %arg1[%183] : memref<32xi32, #tpu.memory_space<smem>>
    %c2_74 = arith.constant 2 : index
    %185 = memref.load %arg2[%c2_74] : memref<4xi32, #tpu.memory_space<smem>>
    %186 = arith.addi %184, %185 : i32
    %187 = arith.index_cast %186 : i32 to index
    %c0_75 = arith.constant 0 : index
    %188 = vector.load %arg3[%187, %c0_75] : memref<48x16xf32, #tpu.memory_space<vmem>>, vector<1x16xf32>
    %c3_i32_76 = arith.constant 3 : i32
    %189 = arith.addi %167, %c3_i32_76 : i32
    %190 = arith.index_cast %189 : i32 to index
    %191 = memref.load %arg1[%190] : memref<32xi32, #tpu.memory_space<smem>>
    %c3_77 = arith.constant 3 : index
    %192 = memref.load %arg2[%c3_77] : memref<4xi32, #tpu.memory_space<smem>>
    %193 = arith.addi %191, %192 : i32
    %194 = arith.index_cast %193 : i32 to index
    %c0_78 = arith.constant 0 : index
    %195 = vector.load %arg3[%194, %c0_78] : memref<48x16xf32, #tpu.memory_space<vmem>>, vector<1x16xf32>
    %196 = tpu.concatenate %174, %181, %188, %195 in 1 : vector<1x16xf32>, vector<1x16xf32>, vector<1x16xf32>, vector<1x16xf32> -> vector<1x64xf32>
    %197 = arith.index_cast %c5_i32 : i32 to index
    %c0_79 = arith.constant 0 : index
    %198 = vector.load %arg4[%197, %c0_79] : memref<8x64xf32, #tpu.memory_space<vmem>>, vector<1x64xf32>
    tpu.vector_store %arg4[%197, %c0_79], %196 {strides = array<i32>} : memref<8x64xf32, #tpu.memory_space<vmem>>, vector<1x64xf32>,
    %c6_i32 = arith.constant 6 : i32
    %199 = arith.addi %0, %c6_i32 : i32
    %c4_i32_80 = arith.constant 4 : i32
    %200 = arith.muli %199, %c4_i32_80 : i32
    %c0_i32_81 = arith.constant 0 : i32
    %201 = arith.addi %200, %c0_i32_81 : i32
    %202 = arith.index_cast %201 : i32 to index
    %203 = memref.load %arg1[%202] : memref<32xi32, #tpu.memory_space<smem>>
    %c0_82 = arith.constant 0 : index
    %204 = memref.load %arg2[%c0_82] : memref<4xi32, #tpu.memory_space<smem>>
    %205 = arith.addi %203, %204 : i32
    %206 = arith.index_cast %205 : i32 to index
    %c0_83 = arith.constant 0 : index
    %207 = vector.load %arg3[%206, %c0_83] : memref<48x16xf32, #tpu.memory_space<vmem>>, vector<1x16xf32>
    %c1_i32_84 = arith.constant 1 : i32
    %208 = arith.addi %200, %c1_i32_84 : i32
    %209 = arith.index_cast %208 : i32 to index
    %210 = memref.load %arg1[%209] : memref<32xi32, #tpu.memory_space<smem>>
    %c1_85 = arith.constant 1 : index
    %211 = memref.load %arg2[%c1_85] : memref<4xi32, #tpu.memory_space<smem>>
    %212 = arith.addi %210, %211 : i32
    %213 = arith.index_cast %212 : i32 to index
    %c0_86 = arith.constant 0 : index
    %214 = vector.load %arg3[%213, %c0_86] : memref<48x16xf32, #tpu.memory_space<vmem>>, vector<1x16xf32>
    %c2_i32_87 = arith.constant 2 : i32
    %215 = arith.addi %200, %c2_i32_87 : i32
    %216 = arith.index_cast %215 : i32 to index
    %217 = memref.load %arg1[%216] : memref<32xi32, #tpu.memory_space<smem>>
    %c2_88 = arith.constant 2 : index
    %218 = memref.load %arg2[%c2_88] : memref<4xi32, #tpu.memory_space<smem>>
    %219 = arith.addi %217, %218 : i32
    %220 = arith.index_cast %219 : i32 to index
    %c0_89 = arith.constant 0 : index
    %221 = vector.load %arg3[%220, %c0_89] : memref<48x16xf32, #tpu.memory_space<vmem>>, vector<1x16xf32>
    %c3_i32_90 = arith.constant 3 : i32
    %222 = arith.addi %200, %c3_i32_90 : i32
    %223 = arith.index_cast %222 : i32 to index
    %224 = memref.load %arg1[%223] : memref<32xi32, #tpu.memory_space<smem>>
    %c3_91 = arith.constant 3 : index
    %225 = memref.load %arg2[%c3_91] : memref<4xi32, #tpu.memory_space<smem>>
    %226 = arith.addi %224, %225 : i32
    %227 = arith.index_cast %226 : i32 to index
    %c0_92 = arith.constant 0 : index
    %228 = vector.load %arg3[%227, %c0_92] : memref<48x16xf32, #tpu.memory_space<vmem>>, vector<1x16xf32>
    %229 = tpu.concatenate %207, %214, %221, %228 in 1 : vector<1x16xf32>, vector<1x16xf32>, vector<1x16xf32>, vector<1x16xf32> -> vector<1x64xf32>
    %230 = arith.index_cast %c6_i32 : i32 to index
    %c0_93 = arith.constant 0 : index
    %231 = vector.load %arg4[%230, %c0_93] : memref<8x64xf32, #tpu.memory_space<vmem>>, vector<1x64xf32>
    tpu.vector_store %arg4[%230, %c0_93], %229 {strides = array<i32>} : memref<8x64xf32, #tpu.memory_space<vmem>>, vector<1x64xf32>,
    %c7_i32 = arith.constant 7 : i32
    %232 = arith.addi %0, %c7_i32 : i32
    %c4_i32_94 = arith.constant 4 : i32
    %233 = arith.muli %232, %c4_i32_94 : i32
    %c0_i32_95 = arith.constant 0 : i32
    %234 = arith.addi %233, %c0_i32_95 : i32
    %235 = arith.index_cast %234 : i32 to index
    %236 = memref.load %arg1[%235] : memref<32xi32, #tpu.memory_space<smem>>
    %c0_96 = arith.constant 0 : index
    %237 = memref.load %arg2[%c0_96] : memref<4xi32, #tpu.memory_space<smem>>
    %238 = arith.addi %236, %237 : i32
    %239 = arith.index_cast %238 : i32 to index
    %c0_97 = arith.constant 0 : index
    %240 = vector.load %arg3[%239, %c0_97] : memref<48x16xf32, #tpu.memory_space<vmem>>, vector<1x16xf32>
    %c1_i32_98 = arith.constant 1 : i32
    %241 = arith.addi %233, %c1_i32_98 : i32
    %242 = arith.index_cast %241 : i32 to index
    %243 = memref.load %arg1[%242] : memref<32xi32, #tpu.memory_space<smem>>
    %c1_99 = arith.constant 1 : index
    %244 = memref.load %arg2[%c1_99] : memref<4xi32, #tpu.memory_space<smem>>
    %245 = arith.addi %243, %244 : i32
    %246 = arith.index_cast %245 : i32 to index
    %c0_100 = arith.constant 0 : index
    %247 = vector.load %arg3[%246, %c0_100] : memref<48x16xf32, #tpu.memory_space<vmem>>, vector<1x16xf32>
    %c2_i32_101 = arith.constant 2 : i32
    %248 = arith.addi %233, %c2_i32_101 : i32
    %249 = arith.index_cast %248 : i32 to index
    %250 = memref.load %arg1[%249] : memref<32xi32, #tpu.memory_space<smem>>
    %c2_102 = arith.constant 2 : index
    %251 = memref.load %arg2[%c2_102] : memref<4xi32, #tpu.memory_space<smem>>
    %252 = arith.addi %250, %251 : i32
    %253 = arith.index_cast %252 : i32 to index
    %c0_103 = arith.constant 0 : index
    %254 = vector.load %arg3[%253, %c0_103] : memref<48x16xf32, #tpu.memory_space<vmem>>, vector<1x16xf32>
    %c3_i32_104 = arith.constant 3 : i32
    %255 = arith.addi %233, %c3_i32_104 : i32
    %256 = arith.index_cast %255 : i32 to index
    %257 = memref.load %arg1[%256] : memref<32xi32, #tpu.memory_space<smem>>
    %c3_105 = arith.constant 3 : index
    %258 = memref.load %arg2[%c3_105] : memref<4xi32, #tpu.memory_space<smem>>
    %259 = arith.addi %257, %258 : i32
    %260 = arith.index_cast %259 : i32 to index
    %c0_106 = arith.constant 0 : index
    %261 = vector.load %arg3[%260, %c0_106] : memref<48x16xf32, #tpu.memory_space<vmem>>, vector<1x16xf32>
    %262 = tpu.concatenate %240, %247, %254, %261 in 1 : vector<1x16xf32>, vector<1x16xf32>, vector<1x16xf32>, vector<1x16xf32> -> vector<1x64xf32>
    %263 = arith.index_cast %c7_i32 : i32 to index
    %c0_107 = arith.constant 0 : index
    %264 = vector.load %arg4[%263, %c0_107] : memref<8x64xf32, #tpu.memory_space<vmem>>, vector<1x64xf32>
    tpu.vector_store %arg4[%263, %c0_107], %262 {strides = array<i32>} : memref<8x64xf32, #tpu.memory_space<vmem>>, vector<1x64xf32>,
    %c8_i32_108 = arith.constant 8 : i32
    return
  }
  func.func @transform_0(%arg0: i32, %arg1: memref<32xi32, #tpu.memory_space<smem>>, %arg2: memref<4xi32, #tpu.memory_space<smem>>) -> (i32, i32) {
    %c0_i32 = arith.constant 0 : i32
    %c0_i32_0 = arith.constant 0 : i32
    %c0_i32_1 = arith.constant 0 : i32
    return %c0_i32, %c0_i32_0 : i32, i32
  }
  func.func @transform_1(%arg0: i32, %arg1: memref<32xi32, #tpu.memory_space<smem>>, %arg2: memref<4xi32, #tpu.memory_space<smem>>) -> (i32, i32) {
    %c0_i32 = arith.constant 0 : i32
    %c0_i32_0 = arith.constant 0 : i32
    return %arg0, %c0_i32 : i32, i32
  }
}

</mosaic_0001>

<bundles_post_ra>
// kernel: tpu_custom_call.1
= control target key start
LH: loop header
LB: loop body
LE: loop exit
PB: predicated region body
PF: predicated region fallthrough
CT: control target
= control target key end

     0   :  { %s824_s0 = inlined_call_operand.vmem [shape: s32[32], index: 0, kind: input, shape index: {}]   ;;  %s825_s2 = inlined_call_operand.vmem [shape: f32[48,16], index: 2, kind: input, shape index: {}]   ;;  %s826_s3 = inlined_call_operand.hbm [shape: f32[8,64], index: 3, kind: output, shape index: {}]   ;;  %s827_s1 = inlined_call_operand.vmem [shape: s32[4], index: 1, kind: input, shape index: {}]  }
   0x1   :  { %s8_s14 = sshll.u32 %s824_s0, 4  ;;  %s12_s17 = sshll.u32 %s827_s1, 4  ;;  %s9_s14 = int_to_ptr.vmem [resolvable:$true] %s8_s14  ;;  %s13_s17 = int_to_ptr.vmem [resolvable:$true] %s12_s17 }
   0x2   :  { %s492_s18 = scalar_lea.vmem %s9_s14, 16  ;;  %p497_p1 = scmp.lt.s32.totalorder %s9_s14, %s9_s14 }
   0x3   :  { %p493_p0 = scmp.ne.s32.totalorder %s9_s14, %s492_s18  ;;  %p498_p2 = scmp.lt.s32.totalorder %s492_s18, %s492_s18 }
   0x5   :  { %p499_p3 = por %p498_p2, %p497_p1 }
   0x7   :  { %p500_p4 = pnand %p499_p3, %p493_p0 }
   0x9   :  { %503 = shalt.err (!%p500_p4)  }
   0xa   :  { %s542_s19 = smov [#allocation3]   ;;  %s504_s20 = scalar_lea.vmem %s13_s17, 16 }
   0xb   :  { %11 = dma.vmem_to_smem %s9_s14, 16, %s542_s19, [#allocation2] }
   0xc   :  { %p505_p5 = scmp.ne.s32.totalorder %s13_s17, %s504_s20  ;;  %p509_p6 = scmp.lt.s32.totalorder %s13_s17, %s13_s17 }
   0xd   :  { %p510_p7 = scmp.lt.s32.totalorder %s504_s20, %s504_s20 }
   0xf   :  { %p511_p8 = por %p510_p7, %p509_p6 }
  0x11   :  { %p512_p9 = pnand %p511_p8, %p505_p5 }
  0x13   :  { %515 = shalt.err (!%p512_p9)  }
  0x14   :  { %s543_s0 = smov [#allocation4]  }
  0x15   :  { %15 = dma.vmem_to_smem %s13_s17, 16, %s543_s0, [#allocation2] }
  0x16   :  { %538 = dma.done.wait [#allocation2], 32 }
  0x17   :  { %539 = vsyncadd [#allocation2], 4294967264 }
  0x18   :  { %17 = sfence }
  0x19   :  { %s445_s1 = sld [smem:[#allocation3 + $0x9]] }
  0x1a   :  { %18 = vsyncpa [#allocation6], 0  ;;  %s574_s21 = sld [smem:[#allocation4 + $0x1]]  ;;  %s452_s23 = sld [smem:[#allocation3 + $0xd]]  ;;  %vm58_vm0 = vcmask 130048   ;;  %vm60_vm1 = vcmask 261120  }
  0x1b   :  { %s431_s22 = sld [smem:[#allocation3 + $0x1]]  ;;  %s438_s24 = sld [smem:[#allocation3 + $0x5]]  ;;  %vm62_vm2 = vcmask 392192   ;;  %vm64_vm3 = vcmask 516096  }
  0x1c   :  { %s466_s25 = sld [smem:[#allocation3 + $0x15]]  ;;  %s459_s26 = sld [smem:[#allocation3 + $0x11]] }
  0x1d   :  { %s576_s27 = sld [smem:[#allocation3 + $0x1d]]  ;;  %s578_s28 = sld [smem:[#allocation3 + $0x19]] }
  0x1e   :  { %s580_s29 = sld [smem:[#allocation3 + $0x6]]  ;;  %s582_s30 = sld [smem:[#allocation4 + $0x2]] }
  0x1f   :  { %s584_s4 = sld [smem:[#allocation3 + $0x2]]  ;;  %s544_s15 = smov 16  }
  0x20   :  { %s117_s5 = sadd.s32 %s574_s21, %s445_s1  ;;  %s158_s13 = sadd.s32 %s452_s23, %s574_s21 }
  0x21   :  { %s31_s6 = sadd.s32 %s574_s21, %s431_s22  ;;  %s118_s9 = scalar_lea.vmem %s825_s2, %s117_s5 }
  0x22   :  { %s32_s12 = scalar_lea.vmem %s825_s2, %s31_s6  ;;  %v119_v0 = vld [vmem:[%s118_s9] sm:$0x1]  ;;  %s76_s14 = sadd.s32 %s574_s21, %s438_s24 }
  0x23   :  { %v33_v1 = vld [vmem:[%s32_s12] sm:$0x1]  ;;  %133 = vrot.lane.b32.xlu1 %v119_v0, %s544_s15  ;;  %s159_s18 = scalar_lea.vmem %s825_s2, %s158_s13  ;;  %s77_s0 = scalar_lea.vmem %s825_s2, %s76_s14 }
  0x24   :  { %47 = vrot.lane.b32.xlu0 %v33_v1, %s544_s15  ;;  %v160_v2 = vld [vmem:[%s159_s18] sm:$0x1]  ;;  %s240_s1 = sadd.s32 %s466_s25, %s574_s21  ;;  %s199_s22 = sadd.s32 %s459_s26, %s574_s21 }
  0x25   :  { %v78_v3 = vld [vmem:[%s77_s0] sm:$0x1]  ;;  %s241_s5 = scalar_lea.vmem %s825_s2, %s240_s1  ;;  %s200_s8 = scalar_lea.vmem %s825_s2, %s199_s22 }
  0x26   :  { %s322_s9 = sadd.s32 %s576_s27, %s574_s21  ;;  %s281_s10 = sadd.s32 %s578_s28, %s574_s21  ;;  %v242_v4 = vld [vmem:[%s241_s5] sm:$0x1] }
  0x27   :  { %174 = vrot.lane.b32.xlu1 %v160_v2, %s544_s15  ;;  %v201_v5 = vld [vmem:[%s200_s8] sm:$0x1]  ;;  %s323_s25 = scalar_lea.vmem %s825_s2, %s322_s9  ;;  %s82_s26 = sadd.s32 %s582_s30, %s580_s29 }
  0x28   :  { %92 = vrot.lane.b32.xlu0 %v78_v3, %s544_s15  ;;  %s282_s16 = scalar_lea.vmem %s825_s2, %s281_s10  ;;  %s37_s17 = sadd.s32 %s582_s30, %s584_s4  ;;  %v324_v6 = vld [vmem:[%s323_s25] sm:$0x1] }
  0x29   :  { %s83_s21 = scalar_lea.vmem %s825_s2, %s82_s26  ;;  %s454_s27 = sld [smem:[#allocation3 + $0xe]]  ;;  %v283_v7 = vld [vmem:[%s282_s16] sm:$0x1] }
  0x2a   :  { %s447_s28 = sld [smem:[#allocation3 + $0xa]]  ;;  %s468_s20 = sld [smem:[#allocation3 + $0x16]]  ;;  %v84_v8 = vld [vmem:[%s83_s21] sm:$0x1] }
  0x2b   :  { %256 = vrot.lane.b32.xlu1 %v242_v4, %s544_s15  ;;  %s38_s1 = scalar_lea.vmem %s825_s2, %s37_s17  ;;  %s461_s4 = sld [smem:[#allocation3 + $0x12]] }
  0x2c   :  { %215 = vrot.lane.b32.xlu0 %v201_v5, %s544_s15  ;;  %s636_s22 = sld [smem:[#allocation3 + $0x1e]]  ;;  %s638_s23 = sld [smem:[#allocation3 + $0x1a]]  ;;  %v39_v9 = vld [vmem:[%s38_s1] sm:$0x1] }
  0x2d   :  { %s640_s24 = sld [smem:[#allocation3 + $0x7]]  ;;  %s644_s5 = sld [smem:[#allocation4 + $0x3]] }
  0x2e   :  { %s646_s6 = sld [smem:[#allocation3 + $0x3]]  ;;  %s649_s8 = sld [smem:[#allocation3 + $0xf]] }
  0x2f   :  { %338 = vrot.lane.b32.xlu1 %v324_v6, %s544_s15  ;;  %s164_s7 = sadd.s32 %s454_s27, %s582_s30  ;;  %s545_s14 = smov 32  }
  0x30   :  { %297 = vrot.lane.b32.xlu0 %v283_v7, %s544_s15  ;;  %s165_s11 = scalar_lea.vmem %s825_s2, %s164_s7  ;;  %s123_s12 = sadd.s32 %s447_s28, %s582_s30 }
  0x31   :  { %s124_s26 = scalar_lea.vmem %s825_s2, %s123_s12  ;;  %s246_s13 = sadd.s32 %s468_s20, %s582_s30  ;;  %v166_v10 = vld [vmem:[%s165_s11] sm:$0x1] }
  0x32   :  { %s205_s16 = sadd.s32 %s461_s4, %s582_s30  ;;  %s662_s17 = sld [smem:[#allocation3 + $0xb]]  ;;  %v125_v11 = vld [vmem:[%s124_s26] sm:$0x1] }
  0x33   :  { %96 = vrot.lane.b32.xlu1 %v84_v8, %s545_s14  ;;  %s247_s21 = scalar_lea.vmem %s825_s2, %s246_s13  ;;  %s206_s20 = scalar_lea.vmem %s825_s2, %s205_s16 }
  0x34   :  { %51 = vrot.lane.b32.xlu0 %v39_v9, %s545_s14  ;;  %s328_s29 = sadd.s32 %s636_s22, %s582_s30  ;;  %s287_s0 = sadd.s32 %s638_s23, %s582_s30  ;;  %v248_v12 = vld [vmem:[%s247_s21] sm:$0x1] }
  0x35   :  { %v207_v13 = vld [vmem:[%s206_s20] sm:$0x1]  ;;  %s329_s7 = scalar_lea.vmem %s825_s2, %s328_s29  ;;  %s288_s11 = scalar_lea.vmem %s825_s2, %s287_s0 }
  0x36   :  { %s88_s22 = sadd.s32 %s644_s5, %s640_s24  ;;  %s43_s30 = sadd.s32 %s644_s5, %s646_s6  ;;  %v330_v14 = vld [vmem:[%s329_s7] sm:$0x1] }
  0x37   :  { %178 = vrot.lane.b32.xlu1 %v166_v10, %s545_s14  ;;  %s470_s23 = sld [smem:[#allocation3 + $0x17]]  ;;  %s463_s12 = sld [smem:[#allocation3 + $0x13]]  ;;  %v289_v15 = vld [vmem:[%s288_s11] sm:$0x1] }
  0x38   :  { %137 = vrot.lane.b32.xlu0 %v125_v11, %s545_s14  ;;  %s89_s26 = scalar_lea.vmem %s825_s2, %s88_s22  ;;  %s44_s18 = scalar_lea.vmem %s825_s2, %s43_s30 }
  0x39   :  { %s170_s24 = sadd.s32 %s649_s8, %s644_s5  ;;  %s129_s6 = sadd.s32 %s662_s17, %s644_s5  ;;  %v90_v16 = vld [vmem:[%s89_s26] sm:$0x1] }
  0x3a   :  { %s484_s19 = sld [smem:[#allocation3 + $0x1f]]  ;;  %s477_s21 = sld [smem:[#allocation3 + $0x1b]]  ;;  %v45_v17 = vld [vmem:[%s44_s18] sm:$0x1] }
  0x3b   :  { %260 = vrot.lane.b32.xlu1 %v248_v12, %s545_s14  ;;  %s171_s20 = scalar_lea.vmem %s825_s2, %s170_s24  ;;  %s130_s1 = scalar_lea.vmem %s825_s2, %s129_s6 }
  0x3c   :  { %219 = vrot.lane.b32.xlu0 %v207_v13, %s545_s14  ;;  %s546_s4 = smov 48   ;;  %v172_v18 = vld [vmem:[%s171_s20] sm:$0x1]  ;;  %s23_s18 = sld [smem:[#allocation3]] }
  0x3d   :  { %s252_s8 = sadd.s32 %s470_s23, %s644_s5  ;;  %s211_s17 = sadd.s32 %s463_s12, %s644_s5  ;;  %v131_v19 = vld [vmem:[%s130_s1] sm:$0x1] }
  0x3e   :  { %s212_s22 = scalar_lea.vmem %s825_s2, %s211_s17  ;;  %s437_s24 = sld [smem:[#allocation3 + $0x4]] }
  0x3f   :  { %342 = vrot.lane.b32.xlu1 %v330_v14, %s545_s14  ;;  %v213_v21 = vld [vmem:[%s212_s22] sm:$0x1]  ;;  %s444_s6 = sld [smem:[#allocation3 + $0x8]]  ;;  %s739_s0 = sld [smem:[#allocation3 + $0x1c]] }
  0x40   :  { %301 = vrot.lane.b32.xlu0 %v289_v15, %s545_s14  ;;  %s253_s14 = scalar_lea.vmem %s825_s2, %s252_s8  ;;  %s334_s30 = sadd.s32 %s484_s19, %s644_s5 }
  0x41   :  { %s293_s25 = sadd.s32 %s477_s21, %s644_s5  ;;  %v254_v20 = vld [vmem:[%s253_s14] sm:$0x1]  ;;  %s335_s15 = scalar_lea.vmem %s825_s2, %s334_s30 }
  0x42   :  { %s294_s16 = scalar_lea.vmem %s825_s2, %s293_s25  ;;  %v336_v22 = vld [vmem:[%s335_s15] sm:$0x1]  ;;  %s730_s5 = sld [smem:[#allocation4]] }
  0x43   :  { %100 = vrot.lane.b32.xlu1 %v90_v16, %s546_s4  ;;  %v295_v23 = vld [vmem:[%s294_s16] sm:$0x1]  ;;  %s451_s19 = sld [smem:[#allocation3 + $0xc]]  ;;  %s734_s27 = sld [smem:[#allocation3 + $0x10]] }
  0x44   :  { %55 = vrot.lane.b32.xlu0 %v45_v17, %s546_s4  ;;  %s732_s21 = sld [smem:[#allocation3 + $0x14]]  ;;  %s748_s10 = sld [smem:[#allocation3 + $0x18]] }
  0x47   :  { %182 = vrot.lane.b32.xlu1 %v172_v18, %s546_s4 }
  0x48   :  { %141 = vrot.lane.b32.xlu0 %v131_v19, %s546_s4  ;;  %s25_s28 = sadd.s32 %s730_s5, %s23_s18  ;;  %s70_s20 = sadd.s32 %s437_s24, %s730_s5 }
  0x49   :  { %s111_s29 = sadd.s32 %s444_s6, %s730_s5  ;;  %s26_s17 = scalar_lea.vmem %s825_s2, %s25_s28 }
  0x4a   :  { %s71_s9 = scalar_lea.vmem %s825_s2, %s70_s20  ;;  %s152_s14 = sadd.s32 %s451_s19, %s730_s5  ;;  %v27_v38 = vld [vmem:[%s26_s17] sm:$0x1] }
  0x4b   :  { %264 = vrot.lane.b32.xlu1 %v254_v20, %s546_s4  ;;  %v72_v39 = vld [vmem:[%s71_s9] sm:$0x1]  ;;  %s112_s30 = scalar_lea.vmem %s825_s2, %s111_s29  ;;  %s153_s12 = scalar_lea.vmem %s825_s2, %s152_s14 }
  0x4c   :  { %223 = vrot.lane.b32.xlu0 %v213_v21, %s546_s4  ;;  %s234_s15 = sadd.s32 %s732_s21, %s730_s5  ;;  %s193_s26 = sadd.s32 %s734_s27, %s730_s5  ;;  %v113_v44 = vld [vmem:[%s112_s30] sm:$0x1] }
  0x4d   :  { %v154_v45 = vld [vmem:[%s153_s12] sm:$0x1]  ;;  %s235_s18 = scalar_lea.vmem %s825_s2, %s234_s15  ;;  %s194_s19 = scalar_lea.vmem %s825_s2, %s193_s26 }
  0x4e   :  { %s316_s21 = sadd.s32 %s739_s0, %s730_s5  ;;  %s275_s27 = sadd.s32 %s748_s10, %s730_s5  ;;  %v236_v54 = vld [vmem:[%s235_s18] sm:$0x1] }
  0x4f   :  { %346 = vrot.lane.b32.xlu1 %v336_v22, %s546_s4  ;;  %v195_v55 = vld [vmem:[%s194_s19] sm:$0x1]  ;;  %s317_s5 = scalar_lea.vmem %s825_s2, %s316_s21  ;;  %s276_s1 = scalar_lea.vmem %s825_s2, %s275_s27 }
  0x50   :  { %305 = vrot.lane.b32.xlu0 %v295_v23, %s546_s4  ;;  %v318_v0 = vld [vmem:[%s317_s5] sm:$0x1]  ;;  %s547_s2 = smov [#allocation5]  }
  0x51   :  { %v277_v1 = vld [vmem:[%s276_s1] sm:$0x1]  ;;  %s359_s8 = sshll.u32 %s547_s2, 4  ;;  %s360_s8 = int_to_ptr.vmem [resolvable:$true] %s359_s8 }
  0x52   :  { %s516_s17 = scalar_lea.vmem %s360_s8, 128  ;;  %p521_p11 = scmp.lt.s32.totalorder %s360_s8, %s360_s8 }
  0x53   :  { %p517_p10 = scmp.ne.s32.totalorder %s360_s8, %s516_s17  ;;  %p522_p12 = scmp.lt.s32.totalorder %s516_s17, %s516_s17 }
  0x55   :  { %p523_p13 = por %p522_p12, %p521_p11 }
  0x57   :  { %p524_p0 = pnand %p523_p13, %p517_p10 }
  0x95   :  { %v134_v24 = vpop.permute.xlu1 %133 }
  0x96   :  { %v48_v25 = vpop.permute.xlu0 %47  ;;  %v144_v52 = vsel %vm58_vm0, %v113_v44, %v134_v24 }
  0x97   :  { %v59_v42 = vsel %vm58_vm0, %v27_v38, %v48_v25 }
  0x99   :  { %v175_v26 = vpop.permute.xlu1 %174 }
  0x9a   :  { %v93_v27 = vpop.permute.xlu0 %92  ;;  %v185_v53 = vsel %vm58_vm0, %v154_v45, %v175_v26 }
  0x9b   :  { %v103_v43 = vsel %vm58_vm0, %v72_v39, %v93_v27 }
  0x9d   :  { %v722_v28 = vpop.permute.xlu1 %256 }
  0x9e   :  { %v724_v29 = vpop.permute.xlu0 %215  ;;  %v267_v62 = vsel %vm58_vm0, %v236_v54, %v722_v28 }
  0x9f   :  { %v226_v63 = vsel %vm58_vm0, %v195_v55, %v724_v29 }
  0xa1   :  { %v726_v30 = vpop.permute.xlu1 %338 }
  0xa2   :  { %v728_v31 = vpop.permute.xlu0 %297  ;;  %v349_v8 = vsel %vm58_vm0, %v318_v0, %v726_v30 }
  0xa3   :  { %v308_v9 = vsel %vm58_vm0, %v277_v1, %v728_v31 }
  0xa5   :  { %v97_v32 = vpop.permute.xlu1 %96 }
  0xa6   :  { %v52_v33 = vpop.permute.xlu0 %51  ;;  %v104_v46 = vsel %vm60_vm1, %v103_v43, %v97_v32 }
  0xa7   :  { %v61_v47 = vsel %vm60_vm1, %v59_v42, %v52_v33 }
  0xa9   :  { %v179_v34 = vpop.permute.xlu1 %178 }
  0xaa   :  { %v138_v35 = vpop.permute.xlu0 %137  ;;  %v186_v56 = vsel %vm60_vm1, %v185_v53, %v179_v34 }
  0xab   :  { %v145_v57 = vsel %vm60_vm1, %v144_v52, %v138_v35 }
  0xad   :  { %v261_v36 = vpop.permute.xlu1 %260 }
  0xae   :  { %v220_v37 = vpop.permute.xlu0 %219  ;;  %v268_v2 = vsel %vm60_vm1, %v267_v62, %v261_v36 }
  0xaf   :  { %v227_v3 = vsel %vm60_vm1, %v226_v63, %v220_v37 }
  0xb1   :  { %v343_v40 = vpop.permute.xlu1 %342 }
  0xb2   :  { %v302_v41 = vpop.permute.xlu0 %301  ;;  %v350_v10 = vsel %vm60_vm1, %v349_v8, %v343_v40 }
  0xb3   :  { %v309_v11 = vsel %vm60_vm1, %v308_v9, %v302_v41 }
  0xb5   :  { %v101_v48 = vpop.permute.xlu1 %100 }
  0xb6   :  { %v56_v49 = vpop.permute.xlu0 %55  ;;  %v105_v50 = vsel %vm62_vm2, %v104_v46, %v101_v48 }
  0xb7   :  { %v63_v51 = vsel %vm62_vm2, %v61_v47, %v56_v49  ;;  %106 = vst.msk [vmem:[#allocation5 + $0x1] sm:$0x1] %vm64_vm3, %v105_v50 }
  0xb8   :  { %65 = vst.msk [vmem:[#allocation5] sm:$0x1] %vm64_vm3, %v63_v51 }
  0xb9   :  { %v183_v58 = vpop.permute.xlu1 %182 }
  0xba   :  { %v142_v59 = vpop.permute.xlu0 %141  ;;  %v187_v60 = vsel %vm62_vm2, %v186_v56, %v183_v58 }
  0xbb   :  { %v146_v61 = vsel %vm62_vm2, %v145_v57, %v142_v59  ;;  %188 = vst.msk [vmem:[#allocation5 + $0x3] sm:$0x1] %vm64_vm3, %v187_v60 }
  0xbc   :  { %147 = vst.msk [vmem:[#allocation5 + $0x2] sm:$0x1] %vm64_vm3, %v146_v61 }
  0xbd   :  { %v265_v4 = vpop.permute.xlu1 %264 }
  0xbe   :  { %v224_v5 = vpop.permute.xlu0 %223  ;;  %v269_v6 = vsel %vm62_vm2, %v268_v2, %v265_v4 }
  0xbf   :  { %v228_v7 = vsel %vm62_vm2, %v227_v3, %v224_v5  ;;  %270 = vst.msk [vmem:[#allocation5 + $0x5] sm:$0x1] %vm64_vm3, %v269_v6 }
  0xc0   :  { %229 = vst.msk [vmem:[#allocation5 + $0x4] sm:$0x1] %vm64_vm3, %v228_v7 }
  0xc1   :  { %v347_v12 = vpop.permute.xlu1 %346 }
  0xc2   :  { %v306_v13 = vpop.permute.xlu0 %305  ;;  %v351_v14 = vsel %vm62_vm2, %v350_v10, %v347_v12 }
  0xc3   :  { %v310_v15 = vsel %vm62_vm2, %v309_v11, %v306_v13  ;;  %352 = vst.msk [vmem:[#allocation5 + $0x7] sm:$0x1] %vm64_vm3, %v351_v14 }
  0xc4   :  { %311 = vst.msk [vmem:[#allocation5 + $0x6] sm:$0x1] %vm64_vm3, %v310_v15 }
  0xc5   :  { %527 = shalt.err (!%p524_p0)
}
  0xc6   :  { %s528_s9 = scalar_lea.hbm %s826_s3, 128 }
  0xc7   :  { %p529_p1 = scmp.ne.s32.totalorder %s826_s3, %s528_s9  ;;  %p532_p2 = scmp.lt.u32.totalorder %s528_s9, %s826_s3 }
  0xc9   :  { %p534_p3 = pnand %p532_p2, %p529_p1 }
  0xcb   :  { %537 = shalt.err (!%p534_p3)
}
  0xcc   :  { %362 = dma.vmem_to_hbm [thread:$0]  %s360_s8, 128, %s826_s3, [#allocation6]  }
  0xcd   :  { %540 = dma.done.wait [#allocation6], 128  }
  0xce   :  { %541 = vsyncadd [#allocation6], 4294967168 }
  0xcf   :  { %366 = vsyncpa [#allocation6], 1 }

</bundles_post_ra>
